<compile_context>
chip_gen: v7x
topology: tpu7x:2x2x1
jax: 0.10.0
libtpu: 0.0.40
codegen_flags: <defaults>
</compile_context>

<pallas_src>
import numpy as np
import jax
import jax.numpy as jnp
from jax import lax
from jax.experimental import pallas as pl
from jax.experimental.pallas import tpu as pltpu


SUB = 8      # sublane multiple
LANES = 128  # lane multiple


def _round_up(v, m):
    return (v + m - 1) // m * m


def _fold_bn(gamma, beta, mean, var, eps=1e-5):
    scale = gamma / jnp.sqrt(var + eps)
    return scale, beta - mean * scale


def _make_kernel(valid_len):
    """valid_len is the true (unpadded) per-sample sequence length L."""

    def kernel(x_ref, w1_ref, w2_ref, w3_ref, b1_ref, b2_ref, b3_ref, out_ref):
        lp = x_ref.shape[-1]                      # padded length (lane axis)

        # ---- conv_1 (1x1) + folded BN1 + ReLU : (P, Cin) @ (Cin, L) --------
        h = jnp.dot(w1_ref[...], x_ref[...],
                    preferred_element_type=jnp.float32)
        h = jnp.maximum(h + b1_ref[...], 0.0)                     # (P, L) f32

        # ---- conv_2 (k=3, stride=1, pad=1) + folded BN2 + ReLU -------------
        # +-1 taps are lane shifts; boundary columns zeroed via (1, L) masks.
        lane = lax.broadcasted_iota(jnp.int32, (1, lp), 1)
        h_prev = jnp.where(lane != 0,
                           pltpu.roll(h, shift=1, axis=1), 0.0)   # h[l-1]
        h_next = jnp.where(lane != valid_len - 1,
                           pltpu.roll(h, shift=lp - 1, axis=1), 0.0)  # h[l+1]

        hb = h.astype(jnp.bfloat16)
        hpb = h_prev.astype(jnp.bfloat16)
        hnb = h_next.astype(jnp.bfloat16)

        h2 = (jnp.dot(w2_ref[0], hpb, preferred_element_type=jnp.float32)
              + jnp.dot(w2_ref[1], hb, preferred_element_type=jnp.float32)
              + jnp.dot(w2_ref[2], hnb, preferred_element_type=jnp.float32))
        h2 = jnp.maximum(h2 + b2_ref[...], 0.0).astype(jnp.bfloat16)  # (P, L)

        # ---- conv_3 (1x1) + folded BN3 + ReLU : (Cout, P) @ (P, L) ---------
        h3 = jnp.dot(w3_ref[...], h2, preferred_element_type=jnp.float32)
        h3 = jnp.maximum(h3 + b3_ref[...], 0.0)                   # (Cout, L)

        # ---- residual add (x_ref re-read here) + final ReLU ----------------
        out_ref[...] = jnp.maximum(
            h3 + x_ref[...].astype(jnp.float32), 0.0).astype(out_ref.dtype)

    return kernel


def bottleneck_forward(x_ncl, w1, w2, w3, bn1, bn2, bn3, eps=1e-5):
    """x_ncl: (N, Cin, L) float32, PyTorch Conv1d NCL layout.

    w1: (P, Cin, 1)   w2: (P, P, 3)   w3: (4P, P, 1)   (PyTorch OIK layout)
    bn*: (gamma, beta, running_mean, running_var)      (eval-mode stats)
    """
    N, Cin, L = x_ncl.shape
    P = w1.shape[0]
    Cout = w3.shape[0]
    assert Cout == Cin, "downsample=None requires inplanes == planes*expansion"

    cin_p = _round_up(Cin, SUB)
    p_p = _round_up(P, SUB)
    cout_p = _round_up(Cout, SUB)          # == cin_p since Cout == Cin
    l_p = _round_up(L, LANES)

    # ---- fold eval-mode BN into conv weights (wrapper-side, one-off) -------
    s1, b1 = _fold_bn(*bn1, eps=eps)
    s2, b2 = _fold_bn(*bn2, eps=eps)
    s3, b3 = _fold_bn(*bn3, eps=eps)

    w1f = jnp.pad(w1[:, :, 0] * s1[:, None],
                  ((0, p_p - P), (0, cin_p - Cin))).astype(jnp.bfloat16)
    w2f = jnp.pad(jnp.transpose(w2, (2, 0, 1)) * s2[None, :, None],
                  ((0, 0), (0, p_p - P), (0, p_p - P))).astype(jnp.bfloat16)
    w3f = jnp.pad(w3[:, :, 0] * s3[:, None],
                  ((0, cout_p - Cout), (0, p_p - P))).astype(jnp.bfloat16)

    b1c = jnp.pad(b1, (0, p_p - P)).reshape(p_p, 1).astype(jnp.float32)
    b2c = jnp.pad(b2, (0, p_p - P)).reshape(p_p, 1).astype(jnp.float32)
    b3c = jnp.pad(b3, (0, cout_p - Cout)).reshape(cout_p, 1).astype(jnp.float32)

    # ---- native NCL layout, bf16, channels->8k, length->128k padding -------
    # (When stacking Bottleneck blocks, keep this layout between blocks and
    #  only pad/slice at model boundaries.)
    x_pad = jnp.pad(x_ncl, ((0, 0), (0, cin_p - Cin), (0, l_p - L))
                    ).astype(jnp.bfloat16)

    # ---- VMEM budget: 2x-buffered x/out blocks + temporaries + headroom ----
    blk_in = cin_p * l_p * 2
    blk_out = cout_p * l_p * 2
    tmps = (5 * p_p + 3 * cout_p) * l_p * 4
    vmem_limit = int(min(max(2 * (blk_in + blk_out) + tmps + (4 << 20),
                             16 << 20), 48 << 20))

    out = pl.pallas_call(
        _make_kernel(L),
        out_shape=jax.ShapeDtypeStruct((N, cout_p, l_p), jnp.bfloat16),
        grid=(N,),
        in_specs=[
            # one sample per grid step; leading batch dim squeezed away
            pl.BlockSpec((None, cin_p, l_p), lambda n: (n, 0, 0)),
            # weights / biases: constant index_map -> DMA'd once, reused
            pl.BlockSpec((p_p, cin_p), lambda n: (0, 0)),
            pl.BlockSpec((3, p_p, p_p), lambda n: (0, 0, 0)),
            pl.BlockSpec((cout_p, p_p), lambda n: (0, 0)),
            pl.BlockSpec((p_p, 1), lambda n: (0, 0)),
            pl.BlockSpec((p_p, 1), lambda n: (0, 0)),
            pl.BlockSpec((cout_p, 1), lambda n: (0, 0)),
        ],
        out_specs=pl.BlockSpec((None, cout_p, l_p), lambda n: (n, 0, 0)),
        compiler_params=pltpu.CompilerParams(
            dimension_semantics=("parallel",),
            vmem_limit_bytes=vmem_limit),
    )(x_pad, w1f, w2f, w3f, b1c, b2c, b3c)

    return out[:, :Cout, :L].astype(jnp.float32)


# ----------------------------- pure-JAX reference ---------------------------
def _bn_eval(x_ncl, gamma, beta, mean, var, eps=1e-5):
    g = gamma[None, :, None]
    b = beta[None, :, None]
    m = mean[None, :, None]
    v = var[None, :, None]
    return (x_ncl - m) / jnp.sqrt(v + eps) * g + b


def _conv1d(x_ncl, w_oik, stride=1, padding=0):
    return lax.conv_general_dilated(
        x_ncl, w_oik, window_strides=(stride,), padding=[(padding, padding)],
        dimension_numbers=("NCH", "OIH", "NCH"),
        precision=lax.Precision.HIGHEST)


def bottleneck_reference(x, w1, w2, w3, bn1, bn2, bn3):
    out = jnp.maximum(_bn_eval(_conv1d(x, w1), *bn1), 0.0)
    out = jnp.maximum(_bn_eval(_conv1d(out, w2, stride=1, padding=1), *bn2), 0.0)
    out = jnp.maximum(_bn_eval(_conv1d(out, w3), *bn3), 0.0)
    return jnp.maximum(out + x, 0.0)


if __name__ == "__main__":
    # Small shapes consistent with the module: planes=8, inplanes=planes*4=32,
    # stride=1, downsample=None, batch=4, sequence length=200 (pads to 256,
    # exercising the length-padding / boundary-mask path).
    N, P, L = 4, 8, 200
    Cin = P * 4          # inplanes
    Cout = P * 4         # planes * expansion

    key = jax.random.PRNGKey(0)
    ks = jax.random.split(key, 7)

    x = jax.random.normal(ks[0], (N, Cin, L), dtype=jnp.float32)
    w1 = 0.1 * jax.random.normal(ks[1], (P, Cin, 1), dtype=jnp.float32)
    w2 = 0.1 * jax.random.normal(ks[2], (P, P, 3), dtype=jnp.float32)
    w3 = 0.1 * jax.random.normal(ks[3], (Cout, P, 1), dtype=jnp.float32)

    def bn_params(k, c):
        k1, k2, k3, k4 = jax.random.split(k, 4)
        gamma = 1.0 + 0.1 * jax.random.normal(k1, (c,), dtype=jnp.float32)
        beta = 0.1 * jax.random.normal(k2, (c,), dtype=jnp.float32)
        mean = 0.1 * jax.random.normal(k3, (c,), dtype=jnp.float32)
        var = jax.random.uniform(k4, (c,), minval=0.5, maxval=1.5,
                                 dtype=jnp.float32)
        return (gamma, beta, mean, var)

    bn1 = bn_params(ks[4], P)
    bn2 = bn_params(ks[5], P)
    bn3 = bn_params(ks[6], Cout)

    fwd = jax.jit(bottleneck_forward)
    out = jax.block_until_ready(fwd(x, w1, w2, w3, bn1, bn2, bn3))
    ref = jax.block_until_ready(
        bottleneck_reference(x, w1, w2, w3, bn1, bn2, bn3))

    # Kernel uses bf16 operands with f32 accumulation; reference is f32
    # HIGHEST — allow bf16-level tolerance.
    np.testing.assert_allclose(np.asarray(out), np.asarray(ref),
                               rtol=2e-2, atol=2e-2)
    print("KERNEL_OK")
</pallas_src>

<mosaic_0001>
module attributes {stable_mosaic.version = 11 : i64} {
  func.func @kernel(%arg0: i32, %arg1: memref<1x32x256xbf16, #tpu.memory_space<vmem>>, %arg2: memref<8x32xbf16, #tpu.memory_space<vmem>>, %arg3: memref<3x8x8xbf16, #tpu.memory_space<vmem>>, %arg4: memref<32x8xbf16, #tpu.memory_space<vmem>>, %arg5: memref<8x1xf32, #tpu.memory_space<vmem>>, %arg6: memref<8x1xf32, #tpu.memory_space<vmem>>, %arg7: memref<32x1xf32, #tpu.memory_space<vmem>>, %arg8: memref<1x32x256xbf16, #tpu.memory_space<vmem>>) attributes {dimension_semantics = [#tpu.dimension_semantics<parallel>], iteration_bounds = array<i64: 4>, scalar_prefetch = 0 : i64, scratch_operands = 0 : i64, tpu.core_type = #tpu.core_type<tc>, window_params = [{transform_indices = @transform_0, window_bounds = array<i64: 1, 32, 256>}, {pipeline_mode = #tpu.pipeline_mode<synchronous>, transform_indices = @transform_1, window_bounds = array<i64: 8, 32>}, {pipeline_mode = #tpu.pipeline_mode<synchronous>, transform_indices = @transform_2, window_bounds = array<i64: 3, 8, 8>}, {pipeline_mode = #tpu.pipeline_mode<synchronous>, transform_indices = @transform_3, window_bounds = array<i64: 32, 8>}, {pipeline_mode = #tpu.pipeline_mode<synchronous>, transform_indices = @transform_4, window_bounds = array<i64: 8, 1>}, {pipeline_mode = #tpu.pipeline_mode<synchronous>, transform_indices = @transform_5, window_bounds = array<i64: 8, 1>}, {pipeline_mode = #tpu.pipeline_mode<synchronous>, transform_indices = @transform_6, window_bounds = array<i64: 32, 1>}, {transform_indices = @transform_7, window_bounds = array<i64: 1, 32, 256>}]} {
    %c0 = arith.constant 0 : index
    %c0_0 = arith.constant 0 : index
    %0 = vector.load %arg2[%c0, %c0_0] : memref<8x32xbf16, #tpu.memory_space<vmem>>, vector<8x32xbf16>
    %c0_1 = arith.constant 0 : index
    %c0_2 = arith.constant 0 : index
    %c0_3 = arith.constant 0 : index
    %1 = vector.load %arg1[%c0_1, %c0_2, %c0_3] : memref<1x32x256xbf16, #tpu.memory_space<vmem>>, vector<1x32x256xbf16>
    %2 = vector.shape_cast %1 : vector<1x32x256xbf16> to vector<32x256xbf16>
    %cst = arith.constant dense<0.000000e+00> : vector<8x256xf32>
    %3 = tpu.matmul %0, %2, %cst {dimension_numbers = #tpu.dot_dimension_numbers<[1], [0], [0], [1], [0, 0, 1, 1], [], []>} : vector<8x32xbf16>, vector<32x256xbf16>, vector<8x256xf32> -> vector<8x256xf32>
    %c0_4 = arith.constant 0 : index
    %c0_5 = arith.constant 0 : index
    %4 = vector.load %arg5[%c0_4, %c0_5] : memref<8x1xf32, #tpu.memory_space<vmem>>, vector<8x1xf32>
    %5 = vector.broadcast %4 : vector<8x1xf32> to vector<8x256xf32>
    %6 = arith.addf %3, %5 : vector<8x256xf32>
    %cst_6 = arith.constant 0.000000e+00 : f32
    %7 = vector.broadcast %cst_6 : f32 to vector<8x256xf32>
    %8 = arith.maximumf %6, %7 : vector<8x256xf32>
    %9 = tpu.iota {dimensions = array<i32: 1>} : vector<1x256xi32>
    %c0_i32 = arith.constant 0 : i32
    %10 = vector.broadcast %c0_i32 : i32 to vector<1x256xi32>
    %11 = arith.cmpi ne, %9, %10 : vector<1x256xi32>
    %c1_i32 = arith.constant 1 : i32
    %12 = tpu.dynamic_rotate %8 by %c1_i32 dim 1 : vector<8x256xf32>, i32 -> vector<8x256xf32>
    %cst_7 = arith.constant 0.000000e+00 : f32
    %13 = vector.shape_cast %11 : vector<1x256xi1> to vector<1x256xi1>
    %14 = vector.broadcast %13 : vector<1x256xi1> to vector<8x256xi1>
    %15 = vector.broadcast %cst_7 : f32 to vector<8x256xf32>
    %16 = arith.select %14, %12, %15 : vector<8x256xi1>, vector<8x256xf32>
    %c199_i32 = arith.constant 199 : i32
    %17 = vector.broadcast %c199_i32 : i32 to vector<1x256xi32>
    %18 = arith.cmpi ne, %9, %17 : vector<1x256xi32>
    %c255_i32 = arith.constant 255 : i32
    %19 = tpu.dynamic_rotate %8 by %c255_i32 dim 1 : vector<8x256xf32>, i32 -> vector<8x256xf32>
    %cst_8 = arith.constant 0.000000e+00 : f32
    %20 = vector.shape_cast %18 : vector<1x256xi1> to vector<1x256xi1>
    %21 = vector.broadcast %20 : vector<1x256xi1> to vector<8x256xi1>
    %22 = vector.broadcast %cst_8 : f32 to vector<8x256xf32>
    %23 = arith.select %21, %19, %22 : vector<8x256xi1>, vector<8x256xf32>
    %24 = arith.truncf %8 : vector<8x256xf32> to vector<8x256xbf16>
    %25 = arith.truncf %16 : vector<8x256xf32> to vector<8x256xbf16>
    %26 = arith.truncf %23 : vector<8x256xf32> to vector<8x256xbf16>
    %c0_9 = arith.constant 0 : index
    %c0_10 = arith.constant 0 : index
    %c0_11 = arith.constant 0 : index
    %27 = vector.load %arg3[%c0_9, %c0_10, %c0_11] : memref<3x8x8xbf16, #tpu.memory_space<vmem>>, vector<1x8x8xbf16>
    %28 = vector.shape_cast %27 : vector<1x8x8xbf16> to vector<8x8xbf16>
    %cst_12 = arith.constant dense<0.000000e+00> : vector<8x256xf32>
    %29 = tpu.matmul %28, %25, %cst_12 {dimension_numbers = #tpu.dot_dimension_numbers<[1], [0], [0], [1], [0, 0, 1, 1], [], []>} : vector<8x8xbf16>, vector<8x256xbf16>, vector<8x256xf32> -> vector<8x256xf32>
    %c1 = arith.constant 1 : index
    %c0_13 = arith.constant 0 : index
    %c0_14 = arith.constant 0 : index
    %30 = vector.load %arg3[%c1, %c0_13, %c0_14] : memref<3x8x8xbf16, #tpu.memory_space<vmem>>, vector<1x8x8xbf16>
    %31 = vector.shape_cast %30 : vector<1x8x8xbf16> to vector<8x8xbf16>
    %cst_15 = arith.constant dense<0.000000e+00> : vector<8x256xf32>
    %32 = tpu.matmul %31, %24, %cst_15 {dimension_numbers = #tpu.dot_dimension_numbers<[1], [0], [0], [1], [0, 0, 1, 1], [], []>} : vector<8x8xbf16>, vector<8x256xbf16>, vector<8x256xf32> -> vector<8x256xf32>
    %33 = arith.addf %29, %32 : vector<8x256xf32>
    %c2 = arith.constant 2 : index
    %c0_16 = arith.constant 0 : index
    %c0_17 = arith.constant 0 : index
    %34 = vector.load %arg3[%c2, %c0_16, %c0_17] : memref<3x8x8xbf16, #tpu.memory_space<vmem>>, vector<1x8x8xbf16>
    %35 = vector.shape_cast %34 : vector<1x8x8xbf16> to vector<8x8xbf16>
    %cst_18 = arith.constant dense<0.000000e+00> : vector<8x256xf32>
    %36 = tpu.matmul %35, %26, %cst_18 {dimension_numbers = #tpu.dot_dimension_numbers<[1], [0], [0], [1], [0, 0, 1, 1], [], []>} : vector<8x8xbf16>, vector<8x256xbf16>, vector<8x256xf32> -> vector<8x256xf32>
    %37 = arith.addf %33, %36 : vector<8x256xf32>
    %c0_19 = arith.constant 0 : index
    %c0_20 = arith.constant 0 : index
    %38 = vector.load %arg6[%c0_19, %c0_20] : memref<8x1xf32, #tpu.memory_space<vmem>>, vector<8x1xf32>
    %39 = vector.broadcast %38 : vector<8x1xf32> to vector<8x256xf32>
    %40 = arith.addf %37, %39 : vector<8x256xf32>
    %cst_21 = arith.constant 0.000000e+00 : f32
    %41 = vector.broadcast %cst_21 : f32 to vector<8x256xf32>
    %42 = arith.maximumf %40, %41 : vector<8x256xf32>
    %43 = arith.truncf %42 : vector<8x256xf32> to vector<8x256xbf16>
    %c0_22 = arith.constant 0 : index
    %c0_23 = arith.constant 0 : index
    %44 = vector.load %arg4[%c0_22, %c0_23] : memref<32x8xbf16, #tpu.memory_space<vmem>>, vector<32x8xbf16>
    %cst_24 = arith.constant dense<0.000000e+00> : vector<32x256xf32>
    %45 = tpu.matmul %44, %43, %cst_24 {dimension_numbers = #tpu.dot_dimension_numbers<[1], [0], [0], [1], [0, 0, 1, 1], [], []>} : vector<32x8xbf16>, vector<8x256xbf16>, vector<32x256xf32> -> vector<32x256xf32>
    %c0_25 = arith.constant 0 : index
    %c0_26 = arith.constant 0 : index
    %46 = vector.load %arg7[%c0_25, %c0_26] : memref<32x1xf32, #tpu.memory_space<vmem>>, vector<32x1xf32>
    %47 = vector.broadcast %46 : vector<32x1xf32> to vector<32x256xf32>
    %48 = arith.addf %45, %47 : vector<32x256xf32>
    %cst_27 = arith.constant 0.000000e+00 : f32
    %49 = vector.broadcast %cst_27 : f32 to vector<32x256xf32>
    %50 = arith.maximumf %48, %49 : vector<32x256xf32>
    %c0_28 = arith.constant 0 : index
    %c0_29 = arith.constant 0 : index
    %c0_30 = arith.constant 0 : index
    %51 = vector.load %arg1[%c0_28, %c0_29, %c0_30] : memref<1x32x256xbf16, #tpu.memory_space<vmem>>, vector<1x32x256xbf16>
    %52 = vector.shape_cast %51 : vector<1x32x256xbf16> to vector<32x256xbf16>
    %53 = arith.extf %52 : vector<32x256xbf16> to vector<32x256xf32>
    %54 = arith.addf %50, %53 : vector<32x256xf32>
    %cst_31 = arith.constant 0.000000e+00 : f32
    %55 = vector.broadcast %cst_31 : f32 to vector<32x256xf32>
    %56 = arith.maximumf %54, %55 : vector<32x256xf32>
    %57 = arith.truncf %56 : vector<32x256xf32> to vector<32x256xbf16>
    %c0_32 = arith.constant 0 : index
    %c0_33 = arith.constant 0 : index
    %c0_34 = arith.constant 0 : index
    %58 = vector.load %arg8[%c0_32, %c0_33, %c0_34] : memref<1x32x256xbf16, #tpu.memory_space<vmem>>, vector<1x32x256xbf16>
    %59 = vector.shape_cast %58 : vector<1x32x256xbf16> to vector<32x256xbf16>
    %60 = vector.shape_cast %57 : vector<32x256xbf16> to vector<1x32x256xbf16>
    tpu.vector_store %arg8[%c0_32, %c0_33, %c0_34], %60 {strides = array<i32>} : memref<1x32x256xbf16, #tpu.memory_space<vmem>>, vector<1x32x256xbf16>,
    return
  }
  func.func @transform_0(%arg0: i32) -> (i32, i32, i32) {
    %c0_i32 = arith.constant 0 : i32
    %c0_i32_0 = arith.constant 0 : i32
    %c0_i32_1 = arith.constant 0 : i32
    return %arg0, %c0_i32, %c0_i32_0 : i32, i32, i32
  }
  func.func @transform_1(%arg0: i32) -> (i32, i32) {
    %c0_i32 = arith.constant 0 : i32
    %c0_i32_0 = arith.constant 0 : i32
    %c0_i32_1 = arith.constant 0 : i32
    return %c0_i32, %c0_i32_0 : i32, i32
  }
  func.func @transform_2(%arg0: i32) -> (i32, i32, i32) {
    %c0_i32 = arith.constant 0 : i32
    %c0_i32_0 = arith.constant 0 : i32
    %c0_i32_1 = arith.constant 0 : i32
    %c0_i32_2 = arith.constant 0 : i32
    return %c0_i32, %c0_i32_0, %c0_i32_1 : i32, i32, i32
  }
  func.func @transform_3(%arg0: i32) -> (i32, i32) {
    %c0_i32 = arith.constant 0 : i32
    %c0_i32_0 = arith.constant 0 : i32
    %c0_i32_1 = arith.constant 0 : i32
    return %c0_i32, %c0_i32_0 : i32, i32
  }
  func.func @transform_4(%arg0: i32) -> (i32, i32) {
    %c0_i32 = arith.constant 0 : i32
    %c0_i32_0 = arith.constant 0 : i32
    %c0_i32_1 = arith.constant 0 : i32
    return %c0_i32, %c0_i32_0 : i32, i32
  }
  func.func @transform_5(%arg0: i32) -> (i32, i32) {
    %c0_i32 = arith.constant 0 : i32
    %c0_i32_0 = arith.constant 0 : i32
    %c0_i32_1 = arith.constant 0 : i32
    return %c0_i32, %c0_i32_0 : i32, i32
  }
  func.func @transform_6(%arg0: i32) -> (i32, i32) {
    %c0_i32 = arith.constant 0 : i32
    %c0_i32_0 = arith.constant 0 : i32
    %c0_i32_1 = arith.constant 0 : i32
    return %c0_i32, %c0_i32_0 : i32, i32
  }
  func.func @transform_7(%arg0: i32) -> (i32, i32, i32) {
    %c0_i32 = arith.constant 0 : i32
    %c0_i32_0 = arith.constant 0 : i32
    %c0_i32_1 = arith.constant 0 : i32
    return %arg0, %c0_i32, %c0_i32_0 : i32, i32, i32
  }
}

</mosaic_0001>

<bundles_post_ra>
// kernel: bottleneck_forward.1
= control target key start
LH: loop header
LB: loop body
LE: loop exit
PB: predicated region body
PF: predicated region fallthrough
CT: control target
= control target key end

     0   :  { %s905_s24 = smov 0   ;;  %s1016_s0 = inlined_call_operand.vmem [shape: bf16[4,32,256], index: 0, kind: input, shape index: {}]   ;;  %s1017_s1 = inlined_call_operand.vmem [shape: bf16[8,32], index: 1, kind: input, shape index: {}]   ;;  %s1018_s2 = inlined_call_operand.vmem [shape: bf16[3,8,8], index: 2, kind: input, shape index: {}]   ;;  %s1019_s3 = inlined_call_operand.vmem [shape: bf16[32,8], index: 3, kind: input, shape index: {}]   ;;  %s1020_s4 = inlined_call_operand.vmem [shape: f32[8,1], index: 4, kind: input, shape index: {}]   ;;  %s1021_s5 = inlined_call_operand.vmem [shape: f32[8,1], index: 5, kind: input, shape index: {}]   ;;  %s1022_s6 = inlined_call_operand.vmem [shape: f32[32,1], index: 6, kind: input, shape index: {}]   ;;  %s1023_s7 = inlined_call_operand.vmem [shape: bf16[4,32,256], index: 7, kind: output, shape index: {}]  }
   0x1 LB: > { %s786_s25 = sadd.s32 4294967295, %s860_s24   ;;  %p790_p0 = scmp.ge.s32.totalorder %s860_s24, 1  ;;  %s860_s24 = sphi %s905_s24, %s17_s24  }
   0x2   : > { %p237_p1 = scmp.lt.s32.totalorder %s860_s24, 5 }
   0x4   : > { %p238_p2 = pnand %p790_p0, %p237_p1 }
   0x5   : > { %p269_p3 = scmp.lt.s32.totalorder (!%p238_p2), %s786_s25, 3  ;;  %v285_v0 = vld [vmem:[%s1020_s4] sm:$0xff] (!%p238_p2)  ;;  %v862_v1 = vmov (!%p238_p2), 0   ;;  %vm311_vm0 = vcmask (!%p238_p2), 261120   ;;  %vm404_vm1 = vcmask (!%p238_p2), 1043456   ;;  %s863_s11 = smov (!%p238_p2), 127   ;;  %v358_v30 = vlaneseq (!%p238_p2) }
   0x6   : > { %241 = sbr.rel (%p238_p2) target bundleno = 833 (0x341), region = 48  ;;  %347 = vmatprep.mubr.bf16.mxu0 (!%p238_p2), %v862_v1  ;;  %836 = vset.pattern.permute.xlu0 (!%p238_p2), %v862_v1  ;;  %v280_v10 = vld [vmem:[%s1017_s1] sm:$0xf] (!%p238_p2)  ;;  %s864_s12 = smov (!%p238_p2), 1   ;;  %v800_v24 = vld [vmem:[%s1018_s2 + $0x4] sm:$0xf] (!%p238_p2) }
   0x7   : > { %288 = vperm.xlu0 (!%p238_p2), %836, %v285_v0   ;;  %493 = vmatprep.mubr.bf16.mxu1 (!%p238_p2), %v862_v1  ;;  %vm400_vm2 = vcmask (!%p238_p2), 64512   ;;  %v572_v25 = vld [vmem:[%s1022_s6] sm:$0xff] (!%p238_p2)  ;;  %v574_v26 = vld [vmem:[%s1022_s6 + $0x10] sm:$0xff] (!%p238_p2)  ;;  %v573_v28 = vld [vmem:[%s1022_s6 + $0x8] sm:$0xff] (!%p238_p2)  ;;  %v359_v31 = vand.u32 (!%p238_p2), 127, %v358_v30 }
   0x8   : > { %847 = vset.pattern.permute.xlu1 (!%p238_p2), %v862_v1  ;;  %v556_v27 = vld [vmem:[%s1021_s5] sm:$0xff] (!%p238_p2)  ;;  %v575_v29 = vld [vmem:[%s1022_s6 + $0x18] sm:$0xff] (!%p238_p2)  ;;  %v805_v51 = vld [vmem:[%s1018_s2 + $0x8] sm:$0xf] (!%p238_p2) }
   0x9   : > { %v360_v32 = vadd.s32 (!%p238_p2), 128, %v359_v31  ;;  %vm382_vm3 = vcmp.lt.s32.totalorder (!%p238_p2), %v359_v31, 127  ;;  %vm367_vm5 = vcmp.lt.s32.totalorder (!%p238_p2), %v359_v31, 1  ;;  %vm361_vm6 = vcmp.ne.s32.totalorder (!%p238_p2), %v359_v31, 0  ;;  %v397_v52 = vld [vmem:[%s1018_s2] sm:$0xf] (!%p238_p2) }
   0xb   : > { %vm377_vm4 = vcmp.ne.s32.totalorder (!%p238_p2), %v360_v32, 199 }
   0xd   : > { %s1025_s25 = smov (!%p269_p3, %s786_s25), 3 }
   0xe   : > { %s819_s28 = sshll.u32 %s1025_s25, 5 }
   0xf   : > { %s273_s8 = scalar_lea.vmem %s1016_s0, %s819_s28  ;;  %s1003_s15 = scalar_lea.vmem %s1023_s7, %s819_s28 }
  0x10   : > { %v928_v2 = vld [vmem:[%s273_s8] sm:$0xff]  ;;  %v930_v3 = vld [vmem:[%s273_s8 + $0x8] sm:$0xff]  ;;  %v932_v4 = vld [vmem:[%s273_s8 + $0x10] sm:$0xff] }
  0x11   : > { %v796_v5 = vcombine.high %v928_v2, %v930_v3  ;;  %v795_v6 = vcombine.low %v928_v2, %v930_v3  ;;  %v938_v7 = vld [vmem:[%s273_s8 + $0x18] sm:$0xff] }
  0x12   : > { %v798_v8 = vcombine.high %v932_v4, %v938_v7  ;;  %v797_v9 = vcombine.low %v932_v4, %v938_v7 }
  0x13   : > { %315 = vmatprep.subr.bf16.mxu0 %v796_v5 }
  0x14   : > { %316 = vmatpush1.bf16.msra.mxu0 %v795_v6 }
  0x15   : > { %317 = vmatprep.subr.bf16.mxu0 %v798_v8 }
  0x18   : > { %318 = vmatpush1.bf16.msra.mxu0 %v797_v9 }
  0x1b   : > { %799 = vmatmul.mubr.msk.bf16.vlgmr.msra.gmra.mrb[0].mxu0 %vm311_vm0, %v280_v10 }
  0x1c   : > { %443 = vmatprep.mubr.bf16.mxu0 %v862_v1 }
  0x86   : > { %v289_v11 = vpop.permute.xlu0 %288 }
  0xee   : > { %v349_v12 = vpop.f32.mrb[0].mxu0 }
  0xef   : > { %v350_v13 = vadd.f32 %v349_v12, %v289_v11  ;;  %v351_v14 = vpop.f32.mrb[1].mxu0 }
  0xf0   : > { %v352_v15 = vadd.f32 %v351_v14, %v289_v11  ;;  %v353_v16 = vpop.f32.mrb[2].mxu0 }
  0xf1   : > { %v356_v17 = vmax.f32 %v350_v13, 0.0  ;;  %v354_v18 = vpop.f32.mrb[3].mxu0 }
  0xf2   : > { %v357_v19 = vmax.f32 %v352_v15, 0.0  ;;  %v852_v18 = vld [vmem:[%s1019_s3] sm:$0xff]  }
  0xf3   : > { %v391_v20 = vpack.c.bf16 %v356_v17, %v356_v17 }
  0xf4   : > { %v392_v21 = vpack.c.bf16 %v357_v19, %v357_v19  ;;  %v842_v22 = vpack.i.bf16 %v357_v19, %v356_v17  ;;  %v853_v19 = vld [vmem:[%s1019_s3 + $0x8] sm:$0xff]  }
  0xf5   : > { %v406_v23 = vsel %vm404_vm1, %v391_v20, 0 }
  0xf6   : > { %801 = vmatprep.subr.msk.bf16.mxu0 %vm404_vm1, %v392_v21  ;;  %843 = vrot.lane.b32.xlu1 %v842_v22, %s863_s11 }
  0xf7   : > { %838 = vrot.lane.b32.xlu0 %v842_v22, %s864_s12  ;;  %412 = vmatpush1.bf16.msra.mxu0 %v406_v23  ;;  %v679_v23 = vunpack.c.l.bf16 %v928_v2 }
  0xfa   : > { %802 = vmatmul.mubr.msk.bf16.vlgmr.msra.gmra.mrb[4].mxu0 %vm400_vm2, %v800_v24  ;;  %559 = vperm.xlu1 %847, %v556_v27   ;;  %v680_v27 = vunpack.c.h.bf16 %v928_v2 }
  0xfb   : > { %578 = vperm.xlu0 %836, %v572_v25   ;;  %545 = vmatprep.mubr.bf16.mxu0 %v862_v1 }
  0xfe   : > { %583 = vperm.xlu1 %847, %v573_v28  }
  0xff   : > { %588 = vperm.xlu0 %836, %v574_v26  }
 0x102   : > { %593 = vperm.xlu1 %847, %v575_v29  }
 0x168   : > { %v844_v33 = vpop.permute.xlu1 %843 }
 0x169   : > { %v846_v34 = vunpack.i.h.bf16 %v844_v33  ;;  %v845_v35 = vunpack.i.l.bf16 %v844_v33  ;;  %v839_v36 = vpop.permute.xlu0 %838 }
 0x16a   : > { %v841_v37 = vunpack.i.h.bf16 %v839_v36  ;;  %v840_v38 = vunpack.i.l.bf16 %v839_v36 }
 0x16b   : > { %v384_v39 = vsel %vm382_vm3, %v846_v34, %v845_v35  ;;  %v383_v40 = vsel %vm382_vm3, %v845_v35, %v846_v34  ;;  %v682_v34 = vunpack.c.h.bf16 %v930_v3 }
 0x16c   : > { %v390_v41 = vsel %vm377_vm4, %v384_v39, 0.0  ;;  %v368_v42 = vsel %vm367_vm5, %v840_v38, %v841_v37  ;;  %v369_v43 = vsel %vm367_vm5, %v841_v37, %v840_v38  ;;  %v395_v44 = vpack.c.bf16 %v383_v40, %v383_v40 }
 0x16d   : > { %v394_v45 = vpack.c.bf16 %v368_v42, %v368_v42  ;;  %v396_v46 = vpack.c.bf16 %v390_v41, %v390_v41  ;;  %v374_v47 = vsel %vm361_vm6, %v369_v43, 0.0 }
 0x16e   : > { %v393_v48 = vpack.c.bf16 %v374_v47, %v374_v47  ;;  %v508_v49 = vsel %vm404_vm1, %v395_v44, 0 }
 0x16f   : > { %803 = vmatprep.subr.msk.bf16.mxu1 %vm404_vm1, %v394_v45  ;;  %806 = vmatprep.subr.msk.bf16.mxu0 %vm404_vm1, %v396_v46 }
 0x170   : > { %v456_v50 = vsel %vm404_vm1, %v393_v48, 0  ;;  %514 = vmatpush1.bf16.msra.mxu0 %v508_v49 }
 0x171   : > { %462 = vmatpush1.bf16.msra.mxu1 %v456_v50 }
 0x173   : > { %807 = vmatmul.mubr.msk.bf16.vlgmr.msra.gmra.mrb[8].mxu0 %vm400_vm2, %v805_v51  ;;  %v684_v51 = vunpack.c.h.bf16 %v932_v4 }
 0x174   : > { %804 = vmatmul.mubr.msk.bf16.vlgmr.msra.gmra.mrb[0].mxu1 %vm400_vm2, %v397_v52 }
 0x175   : > { %650 = vmatprep.mubr.bf16.mxu1 %v862_v1 }
 0x179   : > { %v560_v9 = vpop.permute.xlu1 %559 }
 0x17a   : > { %v579_v20 = vpop.permute.xlu0 %578 }
 0x17d   : > { %v584_v25 = vpop.permute.xlu1 %583 }
 0x17e   : > { %v589_v41 = vpop.permute.xlu0 %588 }
 0x181   : > { %v594_v47 = vpop.permute.xlu1 %593 }
 0x1cd   : > { %v445_v53 = vpop.f32.mrb[4].mxu0 }
 0x1ce   : > { %v447_v54 = vpop.f32.mrb[5].mxu0 }
 0x1cf   : > { %v449_v55 = vpop.f32.mrb[6].mxu0 }
 0x1d0   : > { %v450_v56 = vpop.f32.mrb[7].mxu0  ;;  %v685_v55 = vunpack.c.l.bf16 %v938_v7 }
 0x246   : > { %v547_v57 = vpop.f32.mrb[8].mxu0 }
 0x247   : > { %v495_v58 = vpop.f32.mrb[0].mxu1  ;;  %v549_v59 = vpop.f32.mrb[9].mxu0 }
 0x248   : > { %v496_v60 = vadd.f32 %v495_v58, %v445_v53  ;;  %v497_v61 = vpop.f32.mrb[1].mxu1  ;;  %v551_v62 = vpop.f32.mrb[10].mxu0 }
 0x249   : > { %v498_v63 = vadd.f32 %v497_v61, %v447_v54  ;;  %v499_v0 = vpop.f32.mrb[2].mxu1  ;;  %v552_v5 = vpop.f32.mrb[11].mxu0 }
 0x24a   : > { %v554_v6 = vadd.f32 %v547_v57, %v496_v60  ;;  %v500_v8 = vpop.f32.mrb[3].mxu1  ;;  %v686_v60 = vunpack.c.h.bf16 %v938_v7 }
 0x24b   : > { %v555_v10 = vadd.f32 %v549_v59, %v498_v63 }
 0x24c   : > { %v562_v11 = vadd.f32 %v560_v9, %v554_v6 }
 0x24d   : > { %v563_v12 = vadd.f32 %v560_v9, %v555_v10 }
 0x24e   : > { %v564_v13 = vmax.f32 %v562_v11, 0.0 }
 0x24f   : > { %v565_v14 = vmax.f32 %v563_v12, 0.0 }
 0x250   : > { %v566_v15 = vpack.c.bf16 %v564_v13, %v564_v13 }
 0x251   : > { %v567_v16 = vpack.c.bf16 %v565_v14, %v565_v14 }
 0x252   : > { %v613_v17 = vsel %vm404_vm1, %v566_v15, 0 }
 0x253   : > { %810 = vmatprep.subr.msk.bf16.mxu1 %vm404_vm1, %v567_v16 }
 0x254   : > { %619 = vmatpush1.bf16.msra.mxu1 %v613_v17 }
 0x257   : > { %811 = vmatmul.mubr.msk.bf16.vlgmr.msra.gmra.mrb[4].mxu1 %vm400_vm2, %v852_v18 }
 0x258   : > { %660 = vmatprep.mubr.bf16.mxu1 %v862_v1  ;;  %v681_v1 = vunpack.c.l.bf16 %v930_v3  ;;  %v683_v3 = vunpack.c.l.bf16 %v932_v4 }
 0x25f   : > { %812 = vmatmul.mubr.msk.bf16.gmra.mrb[8].mxu1 %vm400_vm2, %v853_v19 }
 0x32a   : > { %v652_v21 = vpop.f32.mrb[4].mxu1 }
 0x32b   : > { %v653_v22 = vadd.f32 %v652_v21, %v579_v20  ;;  %v654_v24 = vpop.f32.mrb[5].mxu1 }
 0x32c   : > { %v655_v26 = vadd.f32 %v654_v24, %v579_v20  ;;  %v656_v28 = vpop.f32.mrb[6].mxu1 }
 0x32d   : > { %v671_v29 = vmax.f32 %v653_v22, 0.0  ;;  %v657_v30 = vadd.f32 %v656_v28, %v584_v25  ;;  %v658_v31 = vpop.f32.mrb[7].mxu1 }
 0x32e   : > { %v672_v32 = vmax.f32 %v655_v26, 0.0  ;;  %v659_v33 = vadd.f32 %v658_v31, %v584_v25 }
 0x32f   : > { %v687_v35 = vadd.f32 %v679_v23, %v671_v29  ;;  %v673_v36 = vmax.f32 %v657_v30, 0.0 }
 0x330   : > { %v688_v37 = vadd.f32 %v680_v27, %v672_v32  ;;  %v674_v38 = vmax.f32 %v659_v33, 0.0 }
 0x331   : > { %v695_v39 = vmax.f32 %v687_v35, 0.0  ;;  %v689_v40 = vadd.f32 %v681_v1, %v673_v36 }
 0x332   : > { %v696_v42 = vmax.f32 %v688_v37, 0.0  ;;  %v690_v2 = vadd.f32 %v682_v34, %v674_v38  ;;  %v662_v43 = vpop.f32.mrb[8].mxu1 }
 0x333   : > { %v697_v44 = vmax.f32 %v689_v40, 0.0  ;;  %v663_v45 = vadd.f32 %v662_v43, %v589_v41  ;;  %v664_v46 = vpop.f32.mrb[9].mxu1 }
 0x334   : > { %v821_v48 = vpack.c.bf16 %v696_v42, %v695_v39  ;;  %v698_v49 = vmax.f32 %v690_v2, 0.0  ;;  %v665_v50 = vadd.f32 %v664_v46, %v589_v41  ;;  %v666_v52 = vpop.f32.mrb[10].mxu1 }
 0x335   : > { %v675_v53 = vmax.f32 %v663_v45, 0.0  ;;  %v667_v54 = vadd.f32 %v666_v52, %v594_v47  ;;  %v668_v56 = vpop.f32.mrb[11].mxu1 }
 0x336   : > { %727 = vst [vmem:[%s1003_s15] sm:$0xff] %v821_v48  ;;  %v822_v57 = vpack.c.bf16 %v698_v49, %v697_v44  ;;  %v676_v58 = vmax.f32 %v665_v50, 0.0  ;;  %v669_v59 = vadd.f32 %v668_v56, %v594_v47 }
 0x337   : > { %v691_v61 = vadd.f32 %v683_v3, %v675_v53  ;;  %v677_v62 = vmax.f32 %v667_v54, 0.0 }
 0x338   : > { %728 = vst [vmem:[%s1003_s15 + $0x8] sm:$0xff] %v822_v57  ;;  %v692_v63 = vadd.f32 %v684_v51, %v676_v58  ;;  %v678_v0 = vmax.f32 %v669_v59, 0.0 }
 0x339   : > { %v699_v4 = vmax.f32 %v691_v61, 0.0  ;;  %v693_v5 = vadd.f32 %v685_v55, %v677_v62 }
 0x33a   : > { %v700_v6 = vmax.f32 %v692_v63, 0.0  ;;  %v694_v8 = vadd.f32 %v686_v60, %v678_v0 }
 0x33b   : > { %v701_v9 = vmax.f32 %v693_v5, 0.0 }
 0x33c   : > { %v823_v10 = vpack.c.bf16 %v700_v6, %v699_v4  ;;  %v702_v11 = vmax.f32 %v694_v8, 0.0 }
 0x33e   : > { %729 = vst [vmem:[%s1003_s15 + $0x10] sm:$0xff] %v823_v10  ;;  %v824_v12 = vpack.c.bf16 %v702_v11, %v701_v9 }
 0x340   : > { %730 = vst [vmem:[%s1003_s15 + $0x18] sm:$0xff] %v824_v12 }
 0x341 PF: > { %s17_s24 = sadd.s32 1, %s860_s24  }
 0x342   : > { %p14_p4 = scmp.ge.s32.totalorder %s17_s24, 6  }
 0x344   :  { %16 = sbr.rel (!%p14_p4) target bundleno = 1 (0x1), region = 80 }

</bundles_post_ra>
